<compile_context>
chip_gen: v7x
topology: tpu7x:2x2x1
jax: 0.10.0
libtpu: 0.0.40
codegen_flags: <defaults>
</compile_context>

<pallas_src>
import functools
import math

import jax
import jax.numpy as jnp
from jax import lax
from jax.experimental import pallas as pl
from jax.experimental.pallas import tpu as pltpu

_HALF_LOG_2PI = 0.5 * math.log(2.0 * math.pi)

# Target bytes per input block (double-buffered in+out ≈ 12 MiB total,
# safe on v5e's 16 MiB scoped-VMEM default; v6e/v7x have more headroom).
_TARGET_BLOCK_BYTES = 4 * 1024 * 1024


def _split_flow_kernel(z_ref, z_out_ref, ssq_ref, *, s_total, needs_mask, acc_rows):
    # z_ref:     (1, 2, Sb, 128) VMEM tile — [kept half | split half]
    # z_out_ref: (1, Sb, 128)    VMEM tile — pass-through of the kept half
    # ssq_ref:   (1, acc_rows, 128) f32 VMEM blocked output, resident across
    #            the tile axis (per-batch accumulator of squared values).
    j = pl.program_id(1)

    tile = z_ref[...]                         # (1, 2, Sb, 128)
    z_out_ref[...] = tile[:, 0]               # fused copy of the kept half

    sb = tile.shape[2]
    zs = tile[0, 1].astype(jnp.float32)       # (Sb, 128), cast in-register
    if needs_mask:
        row = lax.broadcasted_iota(jnp.int32, zs.shape, 0)
        zs = jnp.where(j * sb + row < s_total, zs, jnp.float32(0.0))
    sq = zs * zs

    @pl.when(j == 0)
    def _():
        ssq_ref[...] = jnp.zeros_like(ssq_ref)

    if sb == acc_rows:
        contrib = sq
    else:
        # Sublane-aligned view: pure VPU elementwise adds, no XLU in hot loop.
        contrib = sq.reshape(sb // acc_rows, acc_rows, 128).sum(axis=0)
    ssq_ref[...] += contrib[None]


def split_flow_forward(z, ldj):
    """Forward pass of SplitFlow (reverse=False).

    Args:
      z:   (B, C, H, W) float32/bfloat16, NCHW.
      ldj: (B,) float.
    Returns:
      (z_first_half, ldj_updated) with shapes ((B, C//2, H, W), (B,)).
    """
    B, C, H, W = z.shape
    assert C % 2 == 0, "channel dim must be even for chunk(2, dim=1)"
    C2 = C // 2
    L = C2 * H * W

    # Free contiguous reshape: dim 1 index 0 = kept half, index 1 = split half.
    z3 = z.reshape(B, 2, L)

    # Lane-pad to a multiple of 128 (zeros do not affect sum(x^2)).
    L_pad = ((L + 127) // 128) * 128
    if L_pad != L:
        z3 = jnp.pad(z3, ((0, 0), (0, 0), (0, L_pad - L)))
    S = L_pad // 128
    z4 = z3.reshape(B, 2, S, 128)

    itemsize = jnp.dtype(z.dtype).itemsize
    quantum = 16 if itemsize < 4 else 8          # bf16 packs 16 sublanes/vreg
    sb_max = (_TARGET_BLOCK_BYTES // (2 * 128 * itemsize)) // quantum * quantum
    sb_max = max(quantum, sb_max)

    if S <= sb_max:
        Sb, T, needs_mask = S, 1, False
    else:
        Sb = sb_max
        T = -(-S // Sb)                          # ceil-div grid + tail mask
        needs_mask = (S % Sb) != 0
    acc_rows = 8 if Sb % 8 == 0 else Sb

    kernel = functools.partial(
        _split_flow_kernel, s_total=S, needs_mask=needs_mask, acc_rows=acc_rows)

    z_first, ssq = pl.pallas_call(
        kernel,
        out_shape=(
            jax.ShapeDtypeStruct((B, S, 128), z.dtype),
            jax.ShapeDtypeStruct((B, acc_rows, 128), jnp.float32),
        ),
        grid_spec=pltpu.PrefetchScalarGridSpec(
            num_scalar_prefetch=0,
            grid=(B, T),
            in_specs=[
                pl.BlockSpec((1, 2, Sb, 128), lambda b, j: (b, 0, j, 0)),
            ],
            out_specs=(
                pl.BlockSpec((1, Sb, 128), lambda b, j: (b, j, 0)),
                # Per-batch accumulator block: same index across the tile
                # axis -> VMEM-resident; blocked per b so batch can be
                # "parallel" (megacore-safe on v7x).
                pl.BlockSpec((1, acc_rows, 128), lambda b, j: (b, 0, 0)),
            ),
        ),
        compiler_params=pltpu.CompilerParams(
            dimension_semantics=("parallel", "arbitrary"),
        ),
        cost_estimate=pl.CostEstimate(
            flops=2 * B * L,
            transcendentals=0,
            bytes_accessed=3 * B * L_pad * itemsize,
        ),
    )(z4)

    # Tiny finalization in the wrapper: reduce per-lane partials, hoisted
    # constants, ldj add.
    ssq_b = jnp.sum(ssq, axis=(1, 2))
    ldj_out = ldj.astype(jnp.float32) - 0.5 * ssq_b - jnp.float32(L * _HALF_LOG_2PI)

    z_out = z_first.reshape(B, L_pad)[:, :L].reshape(B, C2, H, W)
    return z_out, ldj_out


def _reference(z, ldj):
    """Pure-JAX reference mirroring the PyTorch forward (reverse=False)."""
    C = z.shape[1]
    z1, z_split = z[:, : C // 2], z[:, C // 2:]
    logp = -0.5 * z_split.astype(jnp.float32) ** 2 - _HALF_LOG_2PI
    return z1, ldj.astype(jnp.float32) + jnp.sum(logp, axis=(1, 2, 3))


if __name__ == "__main__":
    key = jax.random.PRNGKey(0)
    kz, kl = jax.random.split(key)

    B, C, H, W = 2, 4, 16, 16
    z = jax.random.normal(kz, (B, C, H, W), dtype=jnp.float32)
    ldj = jax.random.normal(kl, (B,), dtype=jnp.float32)

    z_out, ldj_out = split_flow_forward(z, ldj)
    jax.block_until_ready((z_out, ldj_out))

    z_ref, ldj_ref = _reference(z, ldj)
    assert z_out.shape == (B, C // 2, H, W)
    assert ldj_out.shape == (B,)
    assert jnp.allclose(z_out, z_ref)
    assert jnp.allclose(ldj_out, ldj_ref, rtol=1e-5, atol=1e-4)

    # TODO(synk): reverse=True path (prior sampling + concat) not implemented;
    # only the forward (reverse=False) branch is kernelized here.

    print("KERNEL_OK")
</pallas_src>

<mosaic_0001>
module attributes {stable_mosaic.version = 11 : i64} {
  func.func @_split_flow_kernel(%arg0: i32, %arg1: i32, %arg2: memref<1x2x4x128xf32, #tpu.memory_space<vmem>>, %arg3: memref<1x4x128xf32, #tpu.memory_space<vmem>>, %arg4: memref<1x4x128xf32, #tpu.memory_space<vmem>>) attributes {dimension_semantics = [#tpu.dimension_semantics<parallel>, #tpu.dimension_semantics<arbitrary>], iteration_bounds = array<i64: 2, 1>, scalar_prefetch = 0 : i64, scratch_operands = 0 : i64, tpu.core_type = #tpu.core_type<tc>, window_params = [{transform_indices = @transform_0, window_bounds = array<i64: 1, 2, 4, 128>}, {transform_indices = @transform_1, window_bounds = array<i64: 1, 4, 128>}, {transform_indices = @transform_2, window_bounds = array<i64: 1, 4, 128>}]} {
    %c0 = arith.constant 0 : index
    %c0_0 = arith.constant 0 : index
    %c0_1 = arith.constant 0 : index
    %c0_2 = arith.constant 0 : index
    %0 = vector.load %arg2[%c0, %c0_0, %c0_1, %c0_2] : memref<1x2x4x128xf32, #tpu.memory_space<vmem>>, vector<1x2x4x128xf32>
    %1 = vector.extract_strided_slice %0 {offsets = [0, 0, 0, 0], sizes = [1, 1, 4, 128], strides = [1, 1, 1, 1]} : vector<1x2x4x128xf32> to vector<1x1x4x128xf32>
    %2 = vector.shape_cast %1 : vector<1x1x4x128xf32> to vector<1x4x128xf32>
    %c0_3 = arith.constant 0 : index
    %c0_4 = arith.constant 0 : index
    %c0_5 = arith.constant 0 : index
    %3 = vector.load %arg3[%c0_3, %c0_4, %c0_5] : memref<1x4x128xf32, #tpu.memory_space<vmem>>, vector<1x4x128xf32>
    tpu.vector_store %arg3[%c0_3, %c0_4, %c0_5], %2 {strides = array<i32>} : memref<1x4x128xf32, #tpu.memory_space<vmem>>, vector<1x4x128xf32>,
    %4 = vector.extract_strided_slice %0 {offsets = [0, 1, 0, 0], sizes = [1, 1, 4, 128], strides = [1, 1, 1, 1]} : vector<1x2x4x128xf32> to vector<1x1x4x128xf32>
    %5 = vector.shape_cast %4 : vector<1x1x4x128xf32> to vector<4x128xf32>
    %6 = arith.mulf %5, %5 : vector<4x128xf32>
    %c0_i32 = arith.constant 0 : i32
    %7 = arith.cmpi eq, %arg1, %c0_i32 : i32
    %8 = arith.extui %7 : i1 to i32
    %c0_i32_6 = arith.constant 0 : i32
    %9 = arith.cmpi ne, %8, %c0_i32_6 : i32
    scf.if %9 {
      %cst = arith.constant 0.000000e+00 : f32
      %14 = vector.broadcast %cst : f32 to vector<1x4x128xf32>
      %c0_13 = arith.constant 0 : index
      %c0_14 = arith.constant 0 : index
      %c0_15 = arith.constant 0 : index
      %15 = vector.load %arg4[%c0_13, %c0_14, %c0_15] : memref<1x4x128xf32, #tpu.memory_space<vmem>>, vector<1x4x128xf32>
      tpu.vector_store %arg4[%c0_13, %c0_14, %c0_15], %14 {strides = array<i32>} : memref<1x4x128xf32, #tpu.memory_space<vmem>>, vector<1x4x128xf32>,
    } else {
    }
    %c0_7 = arith.constant 0 : index
    %c0_8 = arith.constant 0 : index
    %c0_9 = arith.constant 0 : index
    %10 = vector.load %arg4[%c0_7, %c0_8, %c0_9] : memref<1x4x128xf32, #tpu.memory_space<vmem>>, vector<1x4x128xf32>
    %11 = vector.shape_cast %6 : vector<4x128xf32> to vector<1x4x128xf32>
    %12 = arith.addf %10, %11 : vector<1x4x128xf32>
    %c0_10 = arith.constant 0 : index
    %c0_11 = arith.constant 0 : index
    %c0_12 = arith.constant 0 : index
    %13 = vector.load %arg4[%c0_10, %c0_11, %c0_12] : memref<1x4x128xf32, #tpu.memory_space<vmem>>, vector<1x4x128xf32>
    tpu.vector_store %arg4[%c0_10, %c0_11, %c0_12], %12 {strides = array<i32>} : memref<1x4x128xf32, #tpu.memory_space<vmem>>, vector<1x4x128xf32>,
    return
  }
  func.func @transform_0(%arg0: i32, %arg1: i32) -> (i32, i32, i32, i32) {
    %c0_i32 = arith.constant 0 : i32
    %c0_i32_0 = arith.constant 0 : i32
    %c0_i32_1 = arith.constant 0 : i32
    return %arg0, %c0_i32, %arg1, %c0_i32_0 : i32, i32, i32, i32
  }
  func.func @transform_1(%arg0: i32, %arg1: i32) -> (i32, i32, i32) {
    %c0_i32 = arith.constant 0 : i32
    %c0_i32_0 = arith.constant 0 : i32
    return %arg0, %arg1, %c0_i32 : i32, i32, i32
  }
  func.func @transform_2(%arg0: i32, %arg1: i32) -> (i32, i32, i32) {
    %c0_i32 = arith.constant 0 : i32
    %c0_i32_0 = arith.constant 0 : i32
    %c0_i32_1 = arith.constant 0 : i32
    return %arg0, %c0_i32, %c0_i32_0 : i32, i32, i32
  }
}

</mosaic_0001>

<bundles_post_ra>
// kernel: tpu_custom_call.1
= control target key start
LH: loop header
LB: loop body
LE: loop exit
PB: predicated region body
PF: predicated region fallthrough
CT: control target
= control target key end

     0   :  { %8 = vsyncpa [#allocation3], 0  ;;  %s818_s0 = inlined_call_operand.hbm [shape: f32[2,2,4,128], index: 0, kind: input, shape index: {}]   ;;  %s819_s1 = inlined_call_operand.hbm [shape: f32[2,4,128], index: 1, kind: output, shape index: {0}]   ;;  %s820_s2 = inlined_call_operand.hbm [shape: f32[2,4,128], index: 2, kind: output, shape index: {1}]  }
   0x1   :  { %10 = vsyncpa [#allocation3 + $0x1], 0 }
   0x2   :  { %11 = vsyncpa [#allocation4], 0 }
   0x3   :  { %13 = vsyncpa [#allocation4 + $0x1], 0 }
   0x4   :  { %14 = vsyncpa [#allocation7], 0 }
   0x5   :  { %16 = vsyncpa [#allocation7 + $0x1], 0  ;;  %s603_s9 = smov 0   ;;  %s605_s10 = smov 0  }
   0x6   :  { %s607_s11 = smov 0   ;;  %s609_s12 = smov 0  }
   0x7   :  { %s611_s13 = smov 0   ;;  %s613_s14 = smov 0  }
   0x8 LB: > { %s348_s15 = sadd.s32 4294967295, %s580_s14   ;;  %s349_s16 = sadd.s32 4294967294, %s580_s14   ;;  %s580_s14 = sphi %s613_s14, %s22_s14   ;;  %s576_s13 = sphi %s611_s13, %s835_s13   ;;  %s572_s12 = sphi %s609_s12, %s834_s12   ;;  %s568_s11 = sphi %s607_s11, %s833_s11   ;;  %s564_s10 = sphi %s605_s10, %s832_s10   ;;  %s560_s9 = sphi %s603_s9, %s831_s9  }
   0x9   : > { %s34_s17 = sadd.s32 1, %s576_s13  ;;  %s43_s18 = sadd.s32 1, %s568_s11 }
   0xa   : > { %p36_p0 = scmp.ge.s32.totalorder %s34_s17, 2  ;;  %p50_p1 = scmp.ne.s32.totalorder %s568_s11, %s564_s10 }
   0xb   : > { %p51_p2 = scmp.eq.s32.totalorder %s580_s14, 0  ;;  %p56_p3 = scmp.ne.s32.totalorder %s564_s10, %s560_s9 }
   0xc   : > { %s837_s17 = smov (%p36_p0, %s34_s17), 0  ;;  %p57_p5 = scmp.eq.s32.totalorder %s348_s15, 0 }
   0xd   : > { %p644_p4 = por %p51_p2, %p50_p1  ;;  %s38_s20 = ssub.s32 %s576_s13, %s837_s17 }
   0xe   : > { %p82_p6 = scmp.eq.s32.totalorder %s348_s15, 1  ;;  %p41_p7 = scmp.eq.s32.totalorder %s38_s20, 0 }
   0xf   : > { %p650_p8 = por %p57_p5, %p56_p3  ;;  %p88_p10 = scmp.eq.s32.totalorder %s349_s16, 1 }
  0x10   : > { %p654_p9 = por %p82_p6, %p50_p1  ;;  %p383_p13 = scmp.lt.s32.totalorder %s580_s14, 2 }
  0x11   : > { %s659_s23 = scalar_select %p41_p7, %s568_s11, %s43_s18  }
  0x12   : > { %s824_s22 = scalar_select %p654_p9, 1, 0 }
  0x13   : > { %p661_p11 = por %p88_p10, %p56_p3  ;;  %s134_s25 = sand.u32 1, %s568_s11  }
  0x14   : > { %s352_s26 = sshll.u32 %s134_s25, 3  ;;  %s365_s27 = sshll.u32 %s576_s13, 7 }
  0x15   : > { %s825_s24 = scalar_select %p661_p11, 1, 0 }
  0x16   : > { %s672_s30 = scalar_lea.hbm %s818_s0, %s365_s27  ;;  %s138_s3 = scalar_lea.vmem [#allocation2], %s352_s26 }
  0x17   : > { %s146_s4 = sshll.u32 %s138_s3, 4  ;;  %p678_p0 = pnand %p383_p13, %p644_p4  ;;  %s674_s4 = int_to_ptr.vmem [resolvable:$true] %s146_s4 }
  0x18   : > { %s683_s6 = scalar_lea.sflag [#allocation3], %s134_s25  ;;  %s436_s7 = scalar_lea.hbm %s672_s30, 128 }
  0x19   : > { %p437_p2 = scmp.ne.s32.totalorder %s672_s30, %s436_s7  ;;  %p438_p3 = pneg %p678_p0 }
  0x1a   : > { %s441_s16 = scalar_lea.hbm %s818_s0, 256  ;;  %p442_p4 = scmp.lt.u32.totalorder %s672_s30, %s818_s0 }
  0x1b   : > { %p439_p5 = pnand %p438_p3, %p437_p2  ;;  %p443_p7 = scmp.lt.u32.totalorder %s441_s16, %s436_s7 }
  0x1c   : > { %p445_p13 = scmp.lt.u32.totalorder %s436_s7, %s672_s30 }
  0x1d   : > { %p440_p6 = pneg %p439_p5  ;;  %p444_p10 = por %p443_p7, %p442_p4 }
  0x1f   : > { %p446_p12 = por %p445_p13, %p444_p10 }
  0x21   : > { %p447_p1 = pnand %p446_p12, %p440_p6 }
  0x23   : > { %450 = shalt.err (!%p447_p1)
}
  0x24   : > { %s451_s20 = scalar_lea.vmem %s674_s4, 128  ;;  %s582_s25 = smov [#allocation2]  }
  0x25   : > { %p452_p2 = scmp.ne.s32.totalorder %s674_s4, %s451_s20  ;;  %s456_s26 = sshll.u32 %s582_s25, 4  ;;  %s457_s26 = int_to_ptr.vmem [resolvable:$false] %s456_s26 }
  0x26   : > { %s458_s27 = scalar_lea.vmem %s457_s26, 256  ;;  %p459_p9 = scmp.lt.s32.totalorder %s674_s4, %s457_s26 }
  0x27   : > { %p454_p5 = pnand %p452_p2, %p438_p3  ;;  %p460_p4 = scmp.lt.s32.totalorder %s458_s27, %s451_s20 }
  0x29   : > { %p455_p11 = pneg %p454_p5  ;;  %p461_p7 = por %p460_p4, %p459_p9 }
  0x2b   : > { %p462_p10 = pnand %p461_p7, %p455_p11 }
  0x2d   : > { %465 = shalt.err (!%p462_p10)
}
  0x2e   : > { %s583_s28 = smov 64   ;;  %s584_s29 = smov 4  }
  0x2f   : > { %375 = dma.hbm_to_vmem [thread:$0]  (!%p678_p0), %s672_s30, 128, %s674_s4, %s683_s6, %s583_s28, %s583_s28, %s584_s29  }
  0x30   : > { %p154_p12 = scmp.lt.s32.totalorder %s580_s14, 3  ;;  %p827_p1 = scmp.ge.s32.totalorder %s580_s14, 1 }
  0x32   : > { %p155_p3 = pnand %p827_p1, %p154_p12 }
  0x33   : > { %s715_s3 = sand.u32 (!%p155_p3), 1, %s564_s10  }
  0x34   : > { %158 = sbr.rel (%p155_p3) target bundleno = 110 (0x6e), region = 24  ;;  %s356_s7 = sshll.u32 (!%p155_p3), %s715_s3, 3 }
  0x35   : > { %s161_s8 = scalar_lea.sflag (!%p155_p3), [#allocation3], %s715_s3  ;;  %s164_s15 = scalar_lea.vmem (!%p155_p3), [#allocation2], %s356_s7 }
  0x3b   : > { %547 = dma.done.wait (%p650_p8), %s161_s8, 128  }
  0x3c   : > { %549 = vsyncadd (%p650_p8), %s161_s8, 4294967168  ;;  %s357_s30 = sshll.u32 %s715_s3, 2  ;;  %v585_v0 = vmov 0.0   ;;  %s361_s16 = sshll.u32 %s572_s12, 6  ;;  %v190_v1 = vld [vmem:[%s164_s15] sm:$0xf] }
  0x3d   : > { %s724_s4 = scalar_lea.vmem [#allocation6], %s357_s30  ;;  %s182_s5 = scalar_lea.vmem [#allocation5], %s357_s30  ;;  %v191_v2 = vld [vmem:[%s164_s15 + $0x4] sm:$0xf] }
  0x3e   : > { %198 = vst [vmem:[%s724_s4] sm:$0xf] %v585_v0  ;;  %s222_s6 = sshll.u32 %s182_s5, 4  ;;  %s735_s19 = scalar_lea.hbm %s819_s1, %s361_s16  ;;  %192 = vst [vmem:[%s182_s5] sm:$0xf] %v190_v1  ;;  %v193_v3 = vmul.f32 %v191_v2, %v191_v2  ;;  %s728_s6 = int_to_ptr.vmem [resolvable:$true] %s222_s6 }
  0x3f   : > { %s235_s20 = sshll.u32 %s724_s4, 4  ;;  %s203_s25 = scalar_lea.sflag [#allocation4], %s715_s3  ;;  %s770_s20 = int_to_ptr.vmem [resolvable:$true] %s235_s20 }
  0x40   : > { %s466_s26 = scalar_lea.vmem %s728_s6, 64  ;;  %p828_p9 = scmp.ne.s32.totalorder %s824_s22, 0 }
  0x41   : > { %p467_p8 = scmp.ne.s32.totalorder %s728_s6, %s466_s26  ;;  %s586_s27 = smov [#allocation5]  }
  0x42   : > { %s470_s28 = sshll.u32 %s586_s27, 4  ;;  %s471_s28 = int_to_ptr.vmem [resolvable:$false] %s470_s28 }
  0x43   : > { %p468_p11 = pnand %p467_p8, %p828_p9  ;;  %s472_s29 = scalar_lea.vmem %s471_s28, 128 }
  0x44   : > { %p473_p6 = scmp.lt.s32.totalorder %s728_s6, %s471_s28  ;;  %p474_p13 = scmp.lt.s32.totalorder %s472_s29, %s466_s26 }
  0x45   : > { %v199_v4 = vld [vmem:[%s724_s4] sm:$0xf]  ;;  %p469_p0 = pneg %p468_p11 }
  0x46   : > { %p475_p2 = por %p474_p13, %p473_p6 }
  0x48   : > { %p476_p5 = pnand %p475_p2, %p469_p0 }
  0x4a   : > { %479 = shalt.err (!%p476_p5)
}
  0x4b   : > { %s480_s7 = scalar_lea.hbm %s735_s19, 64  ;;  %s484_s30 = scalar_lea.hbm %s819_s1, 128 }
  0x4c   : > { %p481_p4 = scmp.ne.s32.totalorder %s735_s19, %s480_s7  ;;  %p485_p12 = scmp.lt.u32.totalorder %s735_s19, %s819_s1 }
  0x4d   : > { %p486_p1 = scmp.lt.u32.totalorder %s484_s30, %s480_s7  ;;  %p488_p8 = scmp.lt.u32.totalorder %s480_s7, %s735_s19 }
  0x4e   : > { %p482_p7 = pnand %p481_p4, %p828_p9 }
  0x4f   : > { %p487_p3 = por %p486_p1, %p485_p12 }
  0x50   : > { %p483_p10 = pneg %p482_p7 }
  0x51   : > { %p489_p11 = por %p488_p8, %p487_p3 }
  0x53   : > { %p490_p0 = pnand %p489_p11, %p483_p10 }
  0x55   : > { %493 = shalt.err (!%p490_p0)
}
  0x56   : > { %368 = dma.vmem_to_hbm [thread:$0]  (%p828_p9), %s728_s6, 64, %s735_s19, %s203_s25   ;;  %v200_v5 = vadd.f32 %v199_v4, %v193_v3 }
  0x57   : > { %s766_s27 = scalar_lea.hbm %s820_s2, %s361_s16  ;;  %s208_s28 = scalar_lea.sflag [#allocation7], %s715_s3 }
  0x58   : > { %201 = vst [vmem:[%s724_s4] sm:$0xf] %v200_v5  ;;  %s494_s29 = scalar_lea.vmem %s770_s20, 64  ;;  %s587_s6 = smov [#allocation6]  }
  0x59   : > { %p495_p6 = scmp.ne.s32.totalorder %s770_s20, %s494_s29  ;;  %s498_s12 = sshll.u32 %s587_s6, 4  ;;  %s499_s12 = int_to_ptr.vmem [resolvable:$false] %s498_s12 }
  0x5a   : > { %s500_s19 = scalar_lea.vmem %s499_s12, 128  ;;  %p501_p5 = scmp.lt.s32.totalorder %s770_s20, %s499_s12 }
  0x5b   : > { %p496_p13 = pnand %p495_p6, %p828_p9  ;;  %p502_p4 = scmp.lt.s32.totalorder %s500_s19, %s494_s29 }
  0x5d   : > { %p497_p2 = pneg %p496_p13  ;;  %p503_p7 = por %p502_p4, %p501_p5 }
  0x5f   : > { %p504_p10 = pnand %p503_p7, %p497_p2 }
  0x61   : > { %507 = shalt.err (!%p504_p10)
}
  0x62   : > { %s508_s3 = scalar_lea.hbm %s766_s27, 64  ;;  %s512_s25 = scalar_lea.hbm %s820_s2, 128 }
  0x63   : > { %p509_p12 = scmp.ne.s32.totalorder %s766_s27, %s508_s3  ;;  %p513_p8 = scmp.lt.u32.totalorder %s766_s27, %s820_s2 }
  0x64   : > { %p514_p11 = scmp.lt.u32.totalorder %s512_s25, %s508_s3  ;;  %p516_p6 = scmp.lt.u32.totalorder %s508_s3, %s766_s27 }
  0x65   : > { %p510_p1 = pnand %p509_p12, %p828_p9 }
  0x66   : > { %p515_p0 = por %p514_p11, %p513_p8 }
  0x67   : > { %p511_p3 = pneg %p510_p1 }
  0x68   : > { %p517_p13 = por %p516_p6, %p515_p0 }
  0x6a   : > { %p518_p2 = pnand %p517_p13, %p511_p3 }
  0x6c   : > { %521 = shalt.err (!%p518_p2)
}
  0x6d   : > { %369 = dma.vmem_to_hbm [thread:$0]  (%p828_p9), %s770_s20, 64, %s766_s27, %s208_s28  }
  0x6e PF: > { %s247_s15 = sand.u32 1, %s560_s9   ;;  %p829_p5 = scmp.ne.s32.totalorder %s825_s24, 0 }
  0x6f   : > { %p830_p4 = scmp.ge.s32.totalorder %s580_s14, 2  ;;  %s248_s30 = scalar_lea.sflag [#allocation4], %s247_s15 }
  0x71   : > { %p377_p7 = pnand %p830_p4, %p829_p5 }
  0x73   : > { %551 = dma.done.wait (!%p377_p7), %s248_s30, 64  }
  0x74   : > { %553 = vsyncadd (!%p377_p7), %s248_s30, 4294967232  ;;  %s257_s5 = scalar_lea.sflag [#allocation7], %s247_s15 }
  0x75   : > { %555 = dma.done.wait (!%p377_p7), %s257_s5, 64  }
  0x76   : > { %557 = vsyncadd (!%p377_p7), %s257_s5, 4294967232  ;;  %s22_s14 = sadd.s32 1, %s580_s14   ;;  %s831_s9 = smov %s564_s10 }
  0x77   : > { %p19_p10 = scmp.ge.s32.totalorder %s22_s14, 4   ;;  %s832_s10 = smov %s568_s11 }
  0x78   : > { %s833_s11 = smov %s659_s23  ;;  %s834_s12 = smov %s576_s13 }
  0x79   : > { %s835_s13 = smov %s837_s17  ;;  %21 = sbr.rel (!%p19_p10) target bundleno = 8 (0x8), region = 90 }
  0x80   :  { %262 = vsyncpa [#allocation3], 1 }
  0x81   :  { %264 = vsyncpa [#allocation3 + $0x1], 1 }
  0x82   :  { %265 = vsyncpa [#allocation4], 1 }
  0x83   :  { %267 = vsyncpa [#allocation4 + $0x1], 1 }
  0x84   :  { %268 = vsyncpa [#allocation7], 1 }
  0x85   :  { %270 = vsyncpa [#allocation7 + $0x1], 1 }

</bundles_post_ra>
